<compile_context>
chip_gen: v7x
topology: tpu7x:2x2x1
jax: 0.10.0
libtpu: 0.0.40
codegen_flags: <defaults>
</compile_context>

<pallas_src>
import jax
import jax.numpy as jnp
from jax import lax
from jax.experimental import pallas as pl
from jax.experimental.pallas import tpu as pltpu


def _model_kernel(x_ref, w_ref, b_ref, x2t_ref, sum_ref, v1_ref):
    # Linear: v1 = x @ W^T + b. W is (out_features, in_features); contract dim 1 of both
    # operands so no transpose of W is needed anywhere.
    v1 = lax.dot_general(
        x_ref[...], w_ref[...],
        dimension_numbers=(((1,), (1,)), ((), ())),
        preferred_element_type=jnp.float32,
    ) + b_ref[...]                                   # (8,8) + (1,8) broadcast
    v1_ref[...] = v1.astype(v1_ref.dtype)

    # sum((v1 @ x2) @ v1) == sum_{j,l} colsum(v1)[j] * x2[j,l] * rowsum(v1)[l]
    # Kernel receives x2t = x2.T, so x2t[l, j] = x2[j, l]; with
    #   r (8,1): r[l] = rowsum(v1)[l]   (broadcast along lanes)
    #   c (1,8): c[j] = colsum(v1)[j]   (broadcast along sublanes)
    # the element-wise product x2t * r * c has [l, j] = x2[j, l] * r[l] * c[j].
    # Everything below runs on VPU/XLU; the MXU is done after the Linear.
    c = jnp.sum(v1, axis=0, keepdims=True)           # (1,8) column sums
    r = jnp.sum(v1, axis=1, keepdims=True)           # (8,1) row sums
    prod = x2t_ref[...] * r * c                      # (8,8) VPU multiply
    partial = jnp.sum(prod, axis=1, keepdims=True)   # (8,1) lane reduce
    sum_ref[...] = jnp.sum(partial, axis=0, keepdims=True)  # (1,1) sublane reduce


@jax.jit
def model_forward(x1, w, b, x2):
    """x1: (8,1,8) f32, w: (8,8) f32 (out_features, in_features), b: (8,) f32, x2: (8,8) f32.
    Returns (scalar sum, v1 (8,8))."""
    x = jnp.reshape(x1, (8, 8)).astype(jnp.float32)   # unit-dim reshape: metadata only
    w = w.astype(jnp.float32)
    b2 = jnp.reshape(b, (1, 8)).astype(jnp.float32)
    x2t = jnp.transpose(x2.astype(jnp.float32))       # layout plumbing: lets the kernel stay transpose-free

    sum_out, v1_out = pl.pallas_call(
        _model_kernel,
        out_shape=(
            jax.ShapeDtypeStruct((1, 1), jnp.float32),    # scalar sum as a tiny VMEM tile
            jax.ShapeDtypeStruct((8, 8), jnp.float32),    # v1
        ),
        in_specs=[
            pl.BlockSpec(memory_space=pltpu.MemorySpace.VMEM),   # x   (8,8)
            pl.BlockSpec(memory_space=pltpu.MemorySpace.VMEM),   # w   (8,8)
            pl.BlockSpec(memory_space=pltpu.MemorySpace.VMEM),   # b   (1,8)
            pl.BlockSpec(memory_space=pltpu.MemorySpace.VMEM),   # x2t (8,8)
        ],
        out_specs=(
            pl.BlockSpec(memory_space=pltpu.MemorySpace.VMEM),   # sum (1,1)
            pl.BlockSpec(memory_space=pltpu.MemorySpace.VMEM),   # v1  (8,8)
        ),
        cost_estimate=pl.CostEstimate(flops=1400, transcendentals=0, bytes_accessed=1060),
    )(x, w, b2, x2t)
    return sum_out[0, 0], v1_out


if __name__ == "__main__":
    key = jax.random.PRNGKey(0)
    k1, k2, k3, k4 = jax.random.split(key, 4)

    # Small inputs consistent with the reinterpreted forward pass (see TODO above).
    x1 = jax.random.normal(k1, (8, 1, 8), dtype=jnp.float32)
    x2 = jax.random.normal(k2, (8, 8), dtype=jnp.float32)   # torch default would be zeros((8,8))

    # Deterministic Linear(8, 8) parameters (out_features, in_features).
    w = jax.random.normal(k3, (8, 8), dtype=jnp.float32) * 0.1
    b = jax.random.normal(k4, (8,), dtype=jnp.float32) * 0.1

    s, v1 = model_forward(x1, w, b, x2)
    s, v1 = jax.block_until_ready((s, v1))

    # Pure-JAX reference check.
    xr = jnp.reshape(x1, (8, 8))
    v1_ref = xr @ w.T + b
    s_ref = jnp.sum((v1_ref @ x2) @ v1_ref)
    assert jnp.allclose(v1, v1_ref, atol=1e-4, rtol=1e-4)
    assert jnp.allclose(s, s_ref, atol=1e-2, rtol=1e-4)

    print("KERNEL_OK")
</pallas_src>

<mosaic_0001>
module attributes {stable_mosaic.version = 11 : i64} {
  func.func @_model_kernel(%arg0: memref<8x8xf32, #tpu.memory_space<vmem>>, %arg1: memref<8x8xf32, #tpu.memory_space<vmem>>, %arg2: memref<1x8xf32, #tpu.memory_space<vmem>>, %arg3: memref<8x8xf32, #tpu.memory_space<vmem>>, %arg4: memref<1x1xf32, #tpu.memory_space<vmem>>, %arg5: memref<8x8xf32, #tpu.memory_space<vmem>>) attributes {dimension_semantics = [], scalar_prefetch = 0 : i64, scratch_operands = 0 : i64, tpu.core_type = #tpu.core_type<tc>} {
    %c0 = arith.constant 0 : index
    %c0_0 = arith.constant 0 : index
    %0 = vector.load %arg0[%c0, %c0_0] : memref<8x8xf32, #tpu.memory_space<vmem>>, vector<8x8xf32>
    %c0_1 = arith.constant 0 : index
    %c0_2 = arith.constant 0 : index
    %1 = vector.load %arg1[%c0_1, %c0_2] : memref<8x8xf32, #tpu.memory_space<vmem>>, vector<8x8xf32>
    %cst = arith.constant dense<0.000000e+00> : vector<8x8xf32>
    %2 = tpu.matmul %0, %1, %cst {dimension_numbers = #tpu.dot_dimension_numbers<[1], [1], [0], [0], [0, 0, 1, 0], [], []>} : vector<8x8xf32>, vector<8x8xf32>, vector<8x8xf32> -> vector<8x8xf32>
    %c0_3 = arith.constant 0 : index
    %c0_4 = arith.constant 0 : index
    %3 = vector.load %arg2[%c0_3, %c0_4] : memref<1x8xf32, #tpu.memory_space<vmem>>, vector<1x8xf32>
    %4 = vector.broadcast %3 : vector<1x8xf32> to vector<8x8xf32>
    %5 = arith.addf %2, %4 : vector<8x8xf32>
    %c0_5 = arith.constant 0 : index
    %c0_6 = arith.constant 0 : index
    %6 = vector.load %arg5[%c0_5, %c0_6] : memref<8x8xf32, #tpu.memory_space<vmem>>, vector<8x8xf32>
    tpu.vector_store %arg5[%c0_5, %c0_6], %5 {strides = array<i32>} : memref<8x8xf32, #tpu.memory_space<vmem>>, vector<8x8xf32>,
    %cst_7 = arith.constant dense<0.000000e+00> : vector<8xf32>
    %7 = vector.multi_reduction <add>, %5, %cst_7 [0] : vector<8x8xf32> to vector<8xf32>
    %8 = vector.shape_cast %7 : vector<8xf32> to vector<1x8xf32>
    %cst_8 = arith.constant dense<0.000000e+00> : vector<8xf32>
    %9 = vector.multi_reduction <add>, %5, %cst_8 [1] : vector<8x8xf32> to vector<8xf32>
    %10 = vector.shape_cast %9 : vector<8xf32> to vector<8x1xf32>
    %c0_9 = arith.constant 0 : index
    %c0_10 = arith.constant 0 : index
    %11 = vector.load %arg3[%c0_9, %c0_10] : memref<8x8xf32, #tpu.memory_space<vmem>>, vector<8x8xf32>
    %12 = vector.broadcast %10 : vector<8x1xf32> to vector<8x8xf32>
    %13 = arith.mulf %11, %12 : vector<8x8xf32>
    %14 = vector.broadcast %8 : vector<1x8xf32> to vector<8x8xf32>
    %15 = arith.mulf %13, %14 : vector<8x8xf32>
    %cst_11 = arith.constant dense<0.000000e+00> : vector<8xf32>
    %16 = vector.multi_reduction <add>, %15, %cst_11 [1] : vector<8x8xf32> to vector<8xf32>
    %17 = vector.shape_cast %16 : vector<8xf32> to vector<8x1xf32>
    %cst_12 = arith.constant dense<0.000000e+00> : vector<1xf32>
    %18 = vector.multi_reduction <add>, %17, %cst_12 [0] : vector<8x1xf32> to vector<1xf32>
    %19 = vector.shape_cast %18 : vector<1xf32> to vector<1x1xf32>
    %c0_13 = arith.constant 0 : index
    %c0_14 = arith.constant 0 : index
    %20 = vector.load %arg4[%c0_13, %c0_14] : memref<1x1xf32, #tpu.memory_space<vmem>>, vector<1x1xf32>
    tpu.vector_store %arg4[%c0_13, %c0_14], %19 {strides = array<i32>} : memref<1x1xf32, #tpu.memory_space<vmem>>, vector<1x1xf32>,
    return
  }
}

</mosaic_0001>

<bundles_post_ra>
// kernel: model_forward.1
= control target key start
LH: loop header
LB: loop body
LE: loop exit
PB: predicated region body
PF: predicated region fallthrough
CT: control target
= control target key end

     0   :  { %11 = vsyncpa [#allocation3], 0  ;;  %vm30_vm0 = vcmask 64512   ;;  %v221_v1 = vmov 0.0   ;;  %vm222_vm1 = vmmov 0   ;;  %s296_s0 = inlined_call_operand.vmem [shape: f32[8,8], index: 0, kind: input, shape index: {}]   ;;  %s297_s1 = inlined_call_operand.vmem [shape: f32[8,8], index: 1, kind: input, shape index: {}]   ;;  %s298_s2 = inlined_call_operand.vmem [shape: f32[1,8], index: 2, kind: input, shape index: {}]   ;;  %s299_s3 = inlined_call_operand.vmem [shape: f32[8,8], index: 3, kind: input, shape index: {}]   ;;  %s300_s4 = inlined_call_operand.hbm [shape: f32[1,1], index: 4, kind: output, shape index: {0}]   ;;  %s301_s5 = inlined_call_operand.hbm [shape: f32[8,8], index: 5, kind: output, shape index: {1}]  }
   0x1   :  { %v22_v0 = vld [vmem:[%s297_s1] sm:$0xff]  ;;  %164 = vmatprep.subr.mxu0 %v221_v1  ;;  %166 = vmatprep.mubr.msk.f32.mxu0 %vm222_vm1, %v221_v1 }
   0x2   :  { %12 = vsyncpa [#allocation5], 0  ;;  %165 = vmatpush3.xpose.msk.msra.mxu0 %vm30_vm0, %v22_v0  ;;  %v21_v2 = vld [vmem:[%s296_s0] sm:$0xff] }
   0x3   :  { %v159_v3 = vld [vmem:[%s298_s2] ss:$0 sm:$0xff]  ;;  %s223_s2 = smov [#allocation4]  }
   0x4   :  { %v117_v13 = vld [vmem:[%s299_s3] sm:$0xff]  ;;  %s147_s24 = sshll.u32 %s223_s2, 4  ;;  %s148_s24 = int_to_ptr.vmem [resolvable:$true] %s147_s24 }
   0x5   :  { %167 = vmatmul.mubr.msk.f32.vlgmr.msra.gmra.mrb[0].mxu0 %vm30_vm0, %v21_v2  ;;  %s173_s25 = scalar_lea.vmem %s148_s24, 128  ;;  %p178_p1 = scmp.lt.s32.totalorder %s148_s24, %s148_s24 }
   0x6   :  { %p174_p0 = scmp.ne.s32.totalorder %s148_s24, %s173_s25  ;;  %p179_p2 = scmp.lt.s32.totalorder %s173_s25, %s173_s25 }
   0x8   :  { %p180_p3 = por %p179_p2, %p178_p1 }
   0xa   :  { %p181_p4 = pnand %p180_p3, %p174_p0 }
  0xd8   :  { %v103_v4 = vpop.f32.mrb[0].mxu0 }
  0xd9   :  { %v104_v5 = vadd.f32 %v159_v3, %v103_v4  ;;  %v168_v6 = vpop.f32.mrb[1].mxu0 }
  0xdb   :  { %107 = vst.msk [vmem:[#allocation4] sm:$0xff] %vm30_vm0, %v104_v5  ;;  %v108_v7 = vsel %vm30_vm0, %v104_v5, 0.0 }
  0xdc   :  { %115 = vadd.xlane.f32.xlu0 %v108_v7  ;;  %v109_v8 = vrot.slane %v108_v7, 4 }
  0xde   :  { %v110_v9 = vadd.f32 %v109_v8, %v108_v7 }
  0xe0   :  { %v111_v10 = vrot.slane %v110_v9, 2 }
  0xe2   :  { %v112_v11 = vadd.f32 %v111_v10, %v110_v9 }
  0xe4   :  { %v113_v12 = vrot.slane %v112_v11, 1 }
  0xe6   :  { %v114_v16 = vadd.f32 %v113_v12, %v112_v11 }
 0x169   :  { %v116_v14 = vpop.xlane.xlu0 %115 }
 0x16a   :  { %v118_v15 = vmul.f32 %v117_v13, %v116_v14 }
 0x16c   :  { %v119_v17 = vmul.f32 %v118_v15, %v114_v16 }
 0x16e   :  { %v120_v18 = vsel %vm30_vm0, %v119_v17, 0.0 }
 0x16f   :  { %121 = vadd.xlane.f32.xlu0 %v120_v18 }
 0x170   :  { %184 = shalt.err (!%p181_p4)
}
 0x171   :  { %s185_s3 = scalar_lea.hbm %s301_s5, 128 }
 0x172   :  { %p186_p5 = scmp.ne.s32.totalorder %s301_s5, %s185_s3  ;;  %p189_p6 = scmp.lt.u32.totalorder %s185_s3, %s301_s5 }
 0x174   :  { %p191_p7 = pnand %p189_p6, %p186_p5 }
 0x176   :  { %194 = shalt.err (!%p191_p7)
}
 0x177   :  { %150 = dma.vmem_to_hbm [thread:$0]  %s148_s24, 128, %s301_s5, [#allocation5]   ;;  %vm129_vm2 = vcmask 0  }
 0x178   :  { %s224_s9 = smov [#allocation2]  }
 0x179   :  { %s137_s10 = sshll.u32 %s224_s9, 4  ;;  %s138_s10 = int_to_ptr.vmem [resolvable:$true] %s137_s10 }
 0x17a   :  { %s195_s11 = scalar_lea.vmem %s138_s10, 16  ;;  %s199_s12 = scalar_lea.vmem %s138_s10, 32 }
 0x17b   :  { %p196_p8 = scmp.ne.s32.totalorder %s138_s10, %s195_s11  ;;  %p200_p9 = scmp.lt.s32.totalorder %s138_s10, %s138_s10 }
 0x17c   :  { %p201_p10 = scmp.lt.s32.totalorder %s199_s12, %s195_s11 }
 0x17e   :  { %p202_p11 = por %p201_p10, %p200_p9 }
 0x180   :  { %p203_p12 = pnand %p202_p11, %p196_p8 }
 0x1fc   :  { %v122_v19 = vpop.xlane.xlu0 %121 }
 0x1fd   :  { %v123_v20 = vrot.slane %v122_v19, 4 }
 0x1ff   :  { %v124_v21 = vadd.f32 %v123_v20, %v122_v19 }
 0x201   :  { %v125_v22 = vrot.slane %v124_v21, 2 }
 0x203   :  { %v126_v23 = vadd.f32 %v125_v22, %v124_v21 }
 0x205   :  { %v127_v24 = vrot.slane %v126_v23, 1 }
 0x207   :  { %v128_v25 = vadd.f32 %v127_v24, %v126_v23 }
 0x209   :  { %130 = vst.msk [vmem:[#allocation2] sm:$0x1] %vm129_vm2, %v128_v25 }
 0x20a   :  { %206 = shalt.err (!%p203_p12)
}
 0x20b   :  { %s207_s14 = scalar_lea.hbm %s300_s4, 16 }
 0x20c   :  { %p208_p13 = scmp.ne.s32.totalorder %s300_s4, %s207_s14  ;;  %p211_p0 = scmp.lt.u32.totalorder %s207_s14, %s300_s4 }
 0x20e   :  { %p213_p1 = pnand %p211_p0, %p208_p13 }
 0x210   :  { %216 = shalt.err (!%p213_p1)
}
 0x211   :  { %140 = dma.vmem_to_hbm [thread:$0]  %s138_s10, 16, %s300_s4, [#allocation3]  }
 0x212   :  { %217 = dma.done.wait [#allocation3], 16  }
 0x213   :  { %218 = vsyncadd [#allocation3], 4294967280 }
 0x214   :  { %219 = dma.done.wait [#allocation5], 128  }
 0x215   :  { %220 = vsyncadd [#allocation5], 4294967168 }
 0x216   :  { %157 = vsyncpa [#allocation3], 1 }
 0x217   :  { %158 = vsyncpa [#allocation5], 1 }

</bundles_post_ra>
